<compile_context>
chip_gen: v5e
topology: v5e:2x2
jax: 0.10.0
libtpu: 0.0.40
codegen_flags: <defaults>
</compile_context>

<pallas_src>
import functools

import jax
import jax.numpy as jnp
from jax.experimental import pallas as pl
from jax.experimental.pallas import tpu as pltpu

EPS = 1e-5


def _sr_segment_kernel(x_ref, wc_ref, bc_ref, o_ref, *, tile_e):
    # x_ref : (B, F)          full batch, full input features (resident)
    # wc_ref: (F, 2*tile_e)   fused [W1_tile | W2_tile], pre-transposed (lane-dense)
    # bc_ref: (1, 2*tile_e)   fused [b1_tile | b2_tile]
    # o_ref : (B, tile_e)     normalized output tile
    x = x_ref[...]
    w = wc_ref[...]

    # Single MXU matmul, no transpose; f32 accumulation regardless of operand dtype.
    y = jnp.dot(x, w, preferred_element_type=jnp.float32)      # (B, 2*tile_e) f32
    y = y + bc_ref[...].astype(jnp.float32)

    z = jnp.maximum(y[:, :tile_e], y[:, tile_e:])               # (B, tile_e) f32

    # BatchNorm1d (training mode, affine=False): biased variance over batch dim.
    mean = jnp.mean(z, axis=0, keepdims=True)                   # (1, tile_e)
    centered = z - mean
    var = jnp.mean(centered * centered, axis=0, keepdims=True)
    inv_std = jax.lax.rsqrt(var + EPS)
    o_ref[...] = (centered * inv_std).astype(o_ref.dtype)


def _pick_tile_e(E):
    # Prefer >= 4 grid steps (keeps both v7x TensorCores busy) with lane-dense
    # 128..512-wide tiles; small problems run in a single grid step.
    for cand in (512, 256, 128):
        if E % cand == 0 and E // cand >= 4:
            return cand
    if E <= 512:
        return E
    for cand in (512, 256, 128):
        if E % cand == 0:
            return cand
    return E  # odd E: single full-width block


@functools.partial(jax.jit, static_argnames=("tile_e",))
def sr_segment_layer(x, w1, b1, w2, b2, *, tile_e=None):
    B, F = x.shape
    E = w1.shape[0]
    if tile_e is None:
        tile_e = _pick_tile_e(E)
    assert E % tile_e == 0, "embedding_dim must be divisible by tile_e"
    n_tiles = E // tile_e

    # Fuse + pre-transpose the weights into a lane-dense (F, 2*E) matrix with
    # per-tile interleaving: block j (width 2*tile_e) = [W1 tile j | W2 tile j].
    w1t = jnp.transpose(w1).reshape(F, n_tiles, tile_e)
    w2t = jnp.transpose(w2).reshape(F, n_tiles, tile_e)
    wc = jnp.stack([w1t, w2t], axis=2).reshape(F, 2 * E)

    bc = jnp.stack(
        [b1.reshape(n_tiles, tile_e), b2.reshape(n_tiles, tile_e)], axis=1
    ).reshape(1, 2 * E)

    # VMEM guard: BN needs full-batch statistics so x cannot be tiled along B.
    # Rough double-buffered footprint in bytes; keep headroom vs the ~16-32 MiB
    # scoped default across v5e/v6e/v7x.
    itemsize = jnp.dtype(x.dtype).itemsize
    vmem_est = (2 * itemsize * (B * F + F * 2 * tile_e + 2 * tile_e + B * tile_e)
                + 4 * 2 * B * tile_e)  # f32 matmul/BN intermediates
    assert vmem_est < 24 * 1024 * 1024, (
        "SRSegmentLayer tile does not fit VMEM comfortably; reduce tile_e or "
        "switch to a two-pass (sum/sumsq) BatchNorm design")
    # TODO(synk): for very large B*F, add a two-pass variant that accumulates
    # per-feature sum/sumsq across batch tiles instead of keeping x resident.

    kernel = functools.partial(_sr_segment_kernel, tile_e=tile_e)

    return pl.pallas_call(
        kernel,
        out_shape=jax.ShapeDtypeStruct((B, E), x.dtype),
        grid=(n_tiles,),
        in_specs=[
            pl.BlockSpec((B, F), lambda j: (0, 0)),             # x (resident)
            pl.BlockSpec((F, 2 * tile_e), lambda j: (0, j)),    # fused weight tile
            pl.BlockSpec((1, 2 * tile_e), lambda j: (0, j)),    # fused bias tile
        ],
        out_specs=pl.BlockSpec((B, tile_e), lambda j: (0, j)),
        compiler_params=pltpu.CompilerParams(
            dimension_semantics=("parallel",)),
    )(x, wc, bc)


def sr_segment_layer_ref(x, w1, b1, w2, b2):
    z = jnp.maximum(x @ w1.T + b1, x @ w2.T + b2)
    mean = jnp.mean(z, axis=0, keepdims=True)
    var = jnp.mean((z - mean) ** 2, axis=0, keepdims=True)
    return (z - mean) / jnp.sqrt(var + EPS)


if __name__ == "__main__":
    # Small shapes consistent with the module.
    B = 8               # batch
    IN_FEATURES = 32
    EMBEDDING_DIM = 256

    key = jax.random.PRNGKey(0)
    kx, kw1, kb1, kw2, kb2 = jax.random.split(key, 5)

    # Deterministic parameter init (mimics nn.Linear's uniform(-1/sqrt(fan_in), 1/sqrt(fan_in))).
    bound = 1.0 / (IN_FEATURES ** 0.5)
    x = jax.random.normal(kx, (B, IN_FEATURES), dtype=jnp.float32)
    w1 = jax.random.uniform(kw1, (EMBEDDING_DIM, IN_FEATURES), jnp.float32, -bound, bound)
    b1 = jax.random.uniform(kb1, (EMBEDDING_DIM,), jnp.float32, -bound, bound)
    w2 = jax.random.uniform(kw2, (EMBEDDING_DIM, IN_FEATURES), jnp.float32, -bound, bound)
    b2 = jax.random.uniform(kb2, (EMBEDDING_DIM,), jnp.float32, -bound, bound)

    out = sr_segment_layer(x, w1, b1, w2, b2)   # auto tile_e -> single grid step here
    out = jax.block_until_ready(out)

    ref = sr_segment_layer_ref(x, w1, b1, w2, b2)
    assert out.shape == (B, EMBEDDING_DIM)
    assert jnp.allclose(out, ref, atol=1e-4, rtol=1e-4), "mismatch vs reference"

    print("KERNEL_OK")
</pallas_src>

<mosaic_0001>
module attributes {stable_mosaic.version = 11 : i64} {
  func.func @_sr_segment_kernel(%arg0: i32, %arg1: memref<8x32xf32, #tpu.memory_space<vmem>>, %arg2: memref<32x512xf32, #tpu.memory_space<vmem>>, %arg3: memref<1x512xf32, #tpu.memory_space<vmem>>, %arg4: memref<8x256xf32, #tpu.memory_space<vmem>>) attributes {dimension_semantics = [#tpu.dimension_semantics<parallel>], iteration_bounds = array<i64: 1>, scalar_prefetch = 0 : i64, scratch_operands = 0 : i64, tpu.core_type = #tpu.core_type<tc>, window_params = [{pipeline_mode = #tpu.pipeline_mode<synchronous>, transform_indices = @transform_0, window_bounds = array<i64: 8, 32>}, {transform_indices = @transform_1, window_bounds = array<i64: 32, 512>}, {transform_indices = @transform_2, window_bounds = array<i64: 1, 512>}, {transform_indices = @transform_3, window_bounds = array<i64: 8, 256>}]} {
    %c0 = arith.constant 0 : index
    %c0_0 = arith.constant 0 : index
    %0 = vector.load %arg1[%c0, %c0_0] : memref<8x32xf32, #tpu.memory_space<vmem>>, vector<8x32xf32>
    %c0_1 = arith.constant 0 : index
    %c0_2 = arith.constant 0 : index
    %1 = vector.load %arg2[%c0_1, %c0_2] : memref<32x512xf32, #tpu.memory_space<vmem>>, vector<32x512xf32>
    %cst = arith.constant dense<0.000000e+00> : vector<8x512xf32>
    %2 = tpu.matmul %0, %1, %cst {dimension_numbers = #tpu.dot_dimension_numbers<[1], [0], [0], [1], [0, 0, 1, 1], [], []>} : vector<8x32xf32>, vector<32x512xf32>, vector<8x512xf32> -> vector<8x512xf32>
    %c0_3 = arith.constant 0 : index
    %c0_4 = arith.constant 0 : index
    %3 = vector.load %arg3[%c0_3, %c0_4] : memref<1x512xf32, #tpu.memory_space<vmem>>, vector<1x512xf32>
    %4 = vector.broadcast %3 : vector<1x512xf32> to vector<8x512xf32>
    %5 = arith.addf %2, %4 : vector<8x512xf32>
    %6 = vector.extract_strided_slice %5 {offsets = [0, 0], sizes = [8, 256], strides = [1, 1]} : vector<8x512xf32> to vector<8x256xf32>
    %7 = vector.extract_strided_slice %5 {offsets = [0, 256], sizes = [8, 256], strides = [1, 1]} : vector<8x512xf32> to vector<8x256xf32>
    %8 = arith.maximumf %6, %7 : vector<8x256xf32>
    %cst_5 = arith.constant dense<0.000000e+00> : vector<256xf32>
    %9 = vector.multi_reduction <add>, %8, %cst_5 [0] : vector<8x256xf32> to vector<256xf32>
    %10 = vector.shape_cast %9 : vector<256xf32> to vector<1x256xf32>
    %cst_6 = arith.constant 8.000000e+00 : f32
    %11 = vector.broadcast %cst_6 : f32 to vector<1x256xf32>
    %12 = arith.divf %10, %11 : vector<1x256xf32>
    %13 = vector.broadcast %12 : vector<1x256xf32> to vector<8x256xf32>
    %14 = arith.subf %8, %13 : vector<8x256xf32>
    %15 = arith.mulf %14, %14 : vector<8x256xf32>
    %cst_7 = arith.constant dense<0.000000e+00> : vector<256xf32>
    %16 = vector.multi_reduction <add>, %15, %cst_7 [0] : vector<8x256xf32> to vector<256xf32>
    %17 = vector.shape_cast %16 : vector<256xf32> to vector<1x256xf32>
    %cst_8 = arith.constant 8.000000e+00 : f32
    %18 = vector.broadcast %cst_8 : f32 to vector<1x256xf32>
    %19 = arith.divf %17, %18 : vector<1x256xf32>
    %cst_9 = arith.constant 9.99999974E-6 : f32
    %20 = vector.broadcast %cst_9 : f32 to vector<1x256xf32>
    %21 = arith.addf %19, %20 : vector<1x256xf32>
    %22 = math.rsqrt %21 : vector<1x256xf32>
    %23 = vector.broadcast %22 : vector<1x256xf32> to vector<8x256xf32>
    %24 = arith.mulf %14, %23 : vector<8x256xf32>
    %c0_10 = arith.constant 0 : index
    %c0_11 = arith.constant 0 : index
    %25 = vector.load %arg4[%c0_10, %c0_11] : memref<8x256xf32, #tpu.memory_space<vmem>>, vector<8x256xf32>
    tpu.vector_store %arg4[%c0_10, %c0_11], %24 {strides = array<i32>} : memref<8x256xf32, #tpu.memory_space<vmem>>, vector<8x256xf32>,
    return
  }
  func.func @transform_0(%arg0: i32) -> (i32, i32) {
    %c0_i32 = arith.constant 0 : i32
    %c0_i32_0 = arith.constant 0 : i32
    %c0_i32_1 = arith.constant 0 : i32
    return %c0_i32, %c0_i32_0 : i32, i32
  }
  func.func @transform_1(%arg0: i32) -> (i32, i32) {
    %c0_i32 = arith.constant 0 : i32
    %c0_i32_0 = arith.constant 0 : i32
    return %c0_i32, %arg0 : i32, i32
  }
  func.func @transform_2(%arg0: i32) -> (i32, i32) {
    %c0_i32 = arith.constant 0 : i32
    %c0_i32_0 = arith.constant 0 : i32
    return %c0_i32, %arg0 : i32, i32
  }
  func.func @transform_3(%arg0: i32) -> (i32, i32) {
    %c0_i32 = arith.constant 0 : i32
    %c0_i32_0 = arith.constant 0 : i32
    return %c0_i32, %arg0 : i32, i32
  }
}

</mosaic_0001>

<bundles_post_ra>
// kernel: sr_segment_layer.1
= control target key start
LH: loop header
LB: loop body
LE: loop exit
PB: predicated region body
PF: predicated region fallthrough
CT: control target
= control target key end

     0   :  { %vm42_vm0 = vcmask 261120   ;;  %s330_s0 = inlined_call_operand.vmem [shape: f32[8,32], index: 0, kind: input, shape index: {}]   ;;  %s331_s1 = inlined_call_operand.vmem [shape: f32[32,512], index: 1, kind: input, shape index: {}]   ;;  %s332_s2 = inlined_call_operand.vmem [shape: f32[1,512], index: 2, kind: input, shape index: {}]   ;;  %s333_s3 = inlined_call_operand.hbm [shape: f32[8,256], index: 3, kind: output, shape index: {}]  }
   0x1   :  { %v30_v0 = vld [vmem:[%s331_s1 + $0x70] sm:$0xff]  ;;  %v31_v1 = vld [vmem:[%s331_s1 + $0x78] sm:$0xff]  ;;  %v28_v6 = vld [vmem:[%s331_s1 + $0x60] sm:$0xff] }
   0x2   :  { %v26_v2 = vld [vmem:[%s331_s1 + $0x50] sm:$0xff]  ;;  %98 = vmatpush.msra.mxu2 %v30_v0  ;;  %118 = vmatpush.msra.mxu3 %v31_v1  ;;  %v27_v3 = vld [vmem:[%s331_s1 + $0x58] sm:$0xff]  ;;  %v29_v7 = vld [vmem:[%s331_s1 + $0x68] sm:$0xff] }
   0x3   :  { %v22_v4 = vld [vmem:[%s331_s1 + $0x30] sm:$0xff]  ;;  %v23_v5 = vld [vmem:[%s331_s1 + $0x38] sm:$0xff]  ;;  %v24_v8 = vld [vmem:[%s331_s1 + $0x40] sm:$0xff]  ;;  %58 = vmatpush.msra.mxu0 %v28_v6  ;;  %78 = vmatpush.msra.mxu1 %v29_v7 }
   0x4   :  { %99 = vmatpush.msra.mxu2 %v26_v2  ;;  %119 = vmatpush.msra.mxu3 %v27_v3  ;;  %v18_v9 = vld [vmem:[%s331_s1 + $0x10] sm:$0xff]  ;;  %v19_v10 = vld [vmem:[%s331_s1 + $0x18] sm:$0xff]  ;;  %v25_v11 = vld [vmem:[%s331_s1 + $0x48] sm:$0xff] }
   0x5   :  { %v15_v12 = vld [vmem:[%s330_s0] sm:$0xff]  ;;  %59 = vmatpush.msra.mxu0 %v24_v8  ;;  %79 = vmatpush.msra.mxu1 %v25_v11  ;;  %v21_v14 = vld [vmem:[%s331_s1 + $0x28] sm:$0xff] }
   0x6   :  { %100 = vmatpush.msra.mxu2 %v22_v4  ;;  %120 = vmatpush.msra.mxu3 %v23_v5  ;;  %v20_v13 = vld [vmem:[%s331_s1 + $0x20] sm:$0xff] }
   0x7   :  { %8 = vsyncpa [#allocation3], 0  ;;  %v16_v15 = vld [vmem:[%s331_s1] sm:$0xff]  ;;  %v17_v16 = vld [vmem:[%s331_s1 + $0x8] sm:$0xff]  ;;  %60 = vmatpush.msra.mxu0 %v20_v13  ;;  %80 = vmatpush.msra.mxu1 %v21_v14  ;;  %v247_v17 = vmov 8.0   ;;  %s248_s1 = smov [#allocation2]  }
   0x8   :  { %101 = vmatpush.msra.mxu2 %v18_v9  ;;  %121 = vmatpush.msra.mxu3 %v19_v10  ;;  %215 = vrcp.f32 %v247_v17  ;;  %v32_v18 = vld [vmem:[%s332_s2] sm:$0xf]  ;;  %s198_s2 = sshll.u32 %s248_s1, 4  ;;  %s200_s22 = sshll.u32 %s333_s3, 4  ;;  %s199_s2 = int_to_ptr.vmem [resolvable:$true] %s198_s2  ;;  %s201_s22 = int_to_ptr.hbm [resolvable:$true] %s200_s22 }
   0x9   :  { %211 = vmatmul.msk.f32.vlgmr.msra.gmra.mxu2 %vm42_vm0, %v15_v12  ;;  %212 = vmatmul.msk.f32.vlgmr.msra.gmra.mxu3 %vm42_vm0, %v15_v12  ;;  %v34_v20 = vperm.slane %v32_v18, 0  ;;  %v35_v21 = vperm.slane %v32_v18, 1  ;;  %v36_v22 = vperm.slane %v32_v18, 2  ;;  %v37_v23 = vperm.slane %v32_v18, 3 }
   0xa   :  { %61 = vmatpush.msra.mxu0 %v16_v15  ;;  %81 = vmatpush.msra.mxu1 %v17_v16 }
   0xb   :  { %209 = vmatmul.msk.f32.vlgmr.msra.gmra.mxu0 %vm42_vm0, %v15_v12  ;;  %210 = vmatmul.msk.f32.vlgmr.msra.gmra.mxu1 %vm42_vm0, %v15_v12 }
   0xe   :  { %v216_v19 = vpop.eup %215 }
   0xf   :  { %v141_v26 = vmul.f32 8.0, %v216_v19  ;;  %vm145_vm1 = vweird.f32 %v216_v19 }
  0x11   :  { %v142_v33 = vsub.f32 1.0, %v141_v26 }
  0x13   :  { %v143_v38 = vmul.f32 %v216_v19, %v142_v33 }
  0x15   :  { %v144_v43 = vadd.f32 %v216_v19, %v143_v38 }
  0x17   :  { %v146_v48 = vsel %vm145_vm1, %v216_v19, %v144_v43 }
  0x88   :  { %v63_v24 = vpop.f32.mrf.mxu0  ;;  %v83_v25 = vpop.f32.mrf.mxu1 }
  0x89   :  { %v64_v27 = vadd.f32 %v63_v24, %v34_v20  ;;  %v84_v28 = vadd.f32 %v83_v25, %v35_v21 }
  0x8c   :  { %v103_v29 = vpop.f32.mrf.mxu2  ;;  %v123_v30 = vpop.f32.mrf.mxu3 }
  0x8d   :  { %v104_v31 = vadd.f32 %v103_v29, %v36_v22  ;;  %v124_v32 = vadd.f32 %v123_v30, %v37_v23 }
  0x8f   :  { %v126_v34 = vmax.f32 %v64_v27, %v104_v31  ;;  %v127_v35 = vmax.f32 %v84_v28, %v124_v32 }
  0x91   :  { %v128_v36 = vrot.slane %v126_v34, 4  ;;  %v134_v37 = vrot.slane %v127_v35, 4 }
  0x93   :  { %v129_v39 = vadd.f32 %v128_v36, %v126_v34  ;;  %v135_v40 = vadd.f32 %v134_v37, %v127_v35 }
  0x95   :  { %v130_v41 = vrot.slane %v129_v39, 2  ;;  %v136_v42 = vrot.slane %v135_v40, 2 }
  0x97   :  { %v131_v44 = vadd.f32 %v130_v41, %v129_v39  ;;  %v137_v45 = vadd.f32 %v136_v42, %v135_v40 }
  0x99   :  { %v132_v46 = vrot.slane %v131_v44, 1  ;;  %v138_v47 = vrot.slane %v137_v45, 1 }
  0x9b   :  { %v133_v49 = vadd.f32 %v132_v46, %v131_v44  ;;  %v139_v50 = vadd.f32 %v138_v47, %v137_v45 }
  0x9d   :  { %v147_v51 = vmul.f32 %v146_v48, %v133_v49  ;;  %v148_v52 = vmul.f32 %v146_v48, %v139_v50 }
  0x9f   :  { %v149_v53 = vsub.f32 %v126_v34, %v147_v51  ;;  %v150_v54 = vsub.f32 %v127_v35, %v148_v52 }
  0xa1   :  { %v151_v55 = vmul.f32 %v149_v53, %v149_v53  ;;  %v152_v56 = vmul.f32 %v150_v54, %v150_v54 }
  0xa3   :  { %v153_v57 = vrot.slane %v151_v55, 4  ;;  %v159_v58 = vrot.slane %v152_v56, 4 }
  0xa5   :  { %v154_v59 = vadd.f32 %v153_v57, %v151_v55  ;;  %v160_v60 = vadd.f32 %v159_v58, %v152_v56 }
  0xa7   :  { %v155_v61 = vrot.slane %v154_v59, 2  ;;  %v161_v62 = vrot.slane %v160_v60, 2 }
  0xa9   :  { %v156_v63 = vadd.f32 %v155_v61, %v154_v59  ;;  %v162_v0 = vadd.f32 %v161_v62, %v160_v60 }
  0xab   :  { %v157_v1 = vrot.slane %v156_v63, 1  ;;  %v163_v2 = vrot.slane %v162_v0, 1 }
  0xad   :  { %v158_v3 = vadd.f32 %v157_v1, %v156_v63  ;;  %v164_v4 = vadd.f32 %v163_v2, %v162_v0 }
  0xaf   :  { %v165_v5 = vmul.f32 %v158_v3, %v146_v48  ;;  %v166_v6 = vmul.f32 %v164_v4, %v146_v48 }
  0xb1   :  { %v167_v7 = vadd.f32 1e-05, %v165_v5  ;;  %v168_v8 = vadd.f32 1e-05, %v166_v6 }
  0xb3   :  { %217 = vrsqrt.f32 %v167_v7  ;;  %vm175_vm4 = vweird.f32 %v167_v7  ;;  %vm185_vm6 = vweird.f32 %v168_v8 }
  0xb4   :  { %219 = vrsqrt.f32 %v168_v8 }
  0xb9   :  { %v218_v9 = vpop.eup %217 }
  0xba   :  { %v220_v10 = vpop.eup %219  ;;  %v170_v11 = vmul.f32 %v218_v9, %v167_v7  ;;  %vm176_vm2 = vweird.f32 %v218_v9 }
  0xbb   :  { %v180_v12 = vmul.f32 %v220_v10, %v168_v8  ;;  %vm186_vm3 = vweird.f32 %v220_v10  ;;  %vm177_vm5 = vmor %vm175_vm4, %vm176_vm2 }
  0xbc   :  { %v171_v13 = vmul.f32 %v218_v9, %v170_v11  ;;  %vm187_vm7 = vmor %vm185_vm6, %vm186_vm3 }
  0xbd   :  { %v181_v14 = vmul.f32 %v220_v10, %v180_v12 }
  0xbe   :  { %v172_v15 = vmul.f32 0.5, %v171_v13 }
  0xbf   :  { %v182_v16 = vmul.f32 0.5, %v181_v14 }
  0xc0   :  { %v173_v17 = vsub.f32 1.5, %v172_v15 }
  0xc1   :  { %v183_v18 = vsub.f32 1.5, %v182_v16 }
  0xc2   :  { %v174_v19 = vmul.f32 %v218_v9, %v173_v17 }
  0xc3   :  { %v184_v20 = vmul.f32 %v220_v10, %v183_v18 }
  0xc4   :  { %v178_v21 = vsel %vm177_vm5, %v218_v9, %v174_v19 }
  0xc5   :  { %v188_v22 = vsel %vm187_vm7, %v220_v10, %v184_v20  ;;  %v189_v23 = vmul.f32 %v178_v21, %v149_v53 }
  0xc6   :  { %v190_v24 = vmul.f32 %v188_v22, %v150_v54 }
  0xc7   :  { %191 = vst [vmem:[#allocation2] sm:$0xff] %v189_v23 }
  0xc8   :  { %192 = vst [vmem:[#allocation2 + $0x8] sm:$0xff] %v190_v24 }
  0xc9   :  { %203 = dma.vmem_to_hbm [thread:$0]  %s199_s2, 256, %s201_s22, [#allocation3]  }
  0xca   :  { %245 = dma.done.wait [#allocation3], 256  }
  0xcb   :  { %246 = vsyncadd [#allocation3], 4294967040 }
  0xcc   :  { %208 = vsyncpa [#allocation3], 1 }

</bundles_post_ra>
